<compile_context>
chip_gen: v5e
topology: v5e:2x2
jax: 0.10.0
libtpu: 0.0.40
codegen_flags: <defaults>
</compile_context>

<pallas_src>
import jax
import jax.numpy as jnp
from jax.experimental import pallas as pl
from jax.experimental.pallas import tpu as pltpu


def _normalize_kernel(img_ref, scale_ref, bias_ref, out_ref):
    # img_ref/out_ref: (rows_t, lanes_t) VMEM tiles (lane-dense last dim).
    # scale_ref/bias_ref: (rows_t, 1) per-row f32 scalars, broadcast over lanes.
    x = img_ref[...].astype(jnp.float32)
    out_ref[...] = (x * scale_ref[...] + bias_ref[...]).astype(out_ref.dtype)


def _round_up(x, m):
    return -(-x // m) * m


def _row_pack(dtype):
    """Native sublane packing: 8 rows for 4-byte, 16 for 2-byte, 32 for 1-byte."""
    return 8 * max(1, 4 // jnp.dtype(dtype).itemsize)


def _choose_tiles(rows, lanes, itemsize, row_pack, budget_bytes,
                  total_stream_bytes):
    """Pick a lane-dense, (row_pack, 128)-aligned tile of <= budget_bytes.

    `rows` must be a multiple of row_pack and `lanes` a multiple of 128
    (the wrapper pads).  Guarantees >=2 grid steps for non-trivial inputs so
    megacore sharding and DMA/compute pipelining kick in.
    """
    # Lane tile: largest multiple-of-128 divisor of `lanes` whose block
    # (row_pack x lanes_t) fits the budget.
    max_lane_units = max(1, budget_bytes // (row_pack * itemsize * 128))
    m = lanes // 128
    d = min(m, max_lane_units)
    while m % d:
        d -= 1
    lanes_t = d * 128

    # Row tile: largest multiple-of-row_pack divisor of `rows` whose block
    # (rows_t x lanes_t) fits the budget.
    max_row_units = max(1, budget_bytes // (lanes_t * itemsize * row_pack))
    r = rows // row_pack
    q = min(r, max_row_units)
    while r % q:
        q -= 1
    rows_t = q * row_pack

    # Force >=2 steps along a parallel axis for inputs above ~512 KiB
    # (v7x has 2 TensorCores; a 1-step grid also gets zero pipelining).
    if rows_t == rows and lanes_t == lanes and total_stream_bytes > 512 * 1024:
        if rows % (2 * row_pack) == 0:
            rows_t = rows // 2
        elif lanes % 256 == 0:
            lanes_t = lanes // 2
    return rows_t, lanes_t


def normalize(img: jax.Array, mean: jax.Array, std: jax.Array, *,
              out_dtype=None, budget_bytes=4 * 1024 * 1024,
              donate_input=False) -> jax.Array:
    """(img - mean[:,None,None]) / std[:,None,None] for NCHW img."""
    B, C, H, W = img.shape
    assert mean.shape == (C,) and std.shape == (C,)
    in_dtype = jnp.dtype(img.dtype)
    out_dtype = in_dtype if out_dtype is None else jnp.dtype(out_dtype)

    R, L = B * C, H * W
    img2 = img.reshape(R, L)  # contiguous reshape: free in XLA

    # Pad to a lane-dense, tile-legal slab (robust for arbitrary B/H/W).
    row_pack = max(_row_pack(in_dtype), _row_pack(out_dtype))
    Rp, Lp = _round_up(R, row_pack), _round_up(L, 128)
    if (Rp, Lp) != (R, L):
        img2 = jnp.pad(img2, ((0, Rp - R), (0, Lp - L)))

    # Per-row scale/bias kept in f32 for accuracy (kernel computes in f32 and
    # casts only on the store).
    mean32 = mean.astype(jnp.float32)
    std32 = std.astype(jnp.float32)
    scale_rows = jnp.pad(jnp.tile(1.0 / std32, B), (0, Rp - R)).reshape(Rp, 1)
    bias_rows = jnp.pad(jnp.tile(-mean32 / std32, B), (0, Rp - R)).reshape(Rp, 1)

    itemsize = max(in_dtype.itemsize, out_dtype.itemsize)
    total_stream_bytes = Rp * Lp * (in_dtype.itemsize + out_dtype.itemsize)
    rows_t, lanes_t = _choose_tiles(Rp, Lp, itemsize, row_pack,
                                    budget_bytes, total_stream_bytes)
    grid = (Rp // rows_t, Lp // lanes_t)

    alias = {0: 0} if (donate_input and out_dtype == in_dtype) else {}

    out2 = pl.pallas_call(
        _normalize_kernel,
        out_shape=jax.ShapeDtypeStruct((Rp, Lp), out_dtype),
        grid=grid,
        in_specs=[
            pl.BlockSpec((rows_t, lanes_t), lambda i, j: (i, j)),
            pl.BlockSpec((rows_t, 1), lambda i, j: (i, 0)),
            pl.BlockSpec((rows_t, 1), lambda i, j: (i, 0)),
        ],
        out_specs=pl.BlockSpec((rows_t, lanes_t), lambda i, j: (i, j)),
        compiler_params=pltpu.CompilerParams(
            dimension_semantics=("parallel", "parallel"),
            # 32 MiB: no-op vs the v6e/v7x default, raises v5e's 16 MiB default
            # so ~4 MiB blocks stay fully double-buffered on every generation.
            vmem_limit_bytes=32 * 1024 * 1024,
        ),
        input_output_aliases=alias,
    )(img2, scale_rows, bias_rows)

    if (Rp, Lp) != (R, L):
        out2 = out2[:R, :L]
    return out2.reshape(B, C, H, W)


if __name__ == "__main__":
    # Deterministic parameters (from the module's __init__): C=3 (RGB).
    mean = jnp.array([0.485, 0.456, 0.406], dtype=jnp.float32)
    std = jnp.array([0.229, 0.224, 0.225], dtype=jnp.float32)

    key = jax.random.PRNGKey(0)

    # 1) Small deterministic input: batch=2, channels=3, spatial=16.
    img = jax.random.uniform(key, (2, 3, 16, 16), dtype=jnp.float32)
    out = normalize(img, mean, std)
    jax.block_until_ready(out)
    ref = (img - mean[None, :, None, None]) / std[None, :, None, None]
    assert out.shape == ref.shape and out.dtype == ref.dtype
    assert jnp.allclose(out, ref, atol=1e-6, rtol=1e-6)

    # 2) Non-divisible spatial dims exercise the padded tiling path.
    img2 = jax.random.uniform(jax.random.PRNGKey(1), (2, 3, 15, 17),
                              dtype=jnp.float32)
    out2 = normalize(img2, mean, std)
    jax.block_until_ready(out2)
    ref2 = (img2 - mean[None, :, None, None]) / std[None, :, None, None]
    assert jnp.allclose(out2, ref2, atol=1e-6, rtol=1e-6)

    # 3) Fused bf16 output (dtype cast folded into the store -> fewer HBM bytes).
    out3 = normalize(img, mean, std, out_dtype=jnp.bfloat16)
    jax.block_until_ready(out3)
    ref3 = ref.astype(jnp.bfloat16)
    assert out3.dtype == jnp.bfloat16
    assert jnp.allclose(out3.astype(jnp.float32), ref3.astype(jnp.float32),
                        atol=2e-2, rtol=2e-2)

    print("KERNEL_OK")
</pallas_src>

<mosaic_0001>
module attributes {stable_mosaic.version = 11 : i64} {
  func.func @_normalize_kernel(%arg0: i32, %arg1: i32, %arg2: memref<8x256xf32, #tpu.memory_space<vmem>>, %arg3: memref<8x1xf32, #tpu.memory_space<vmem>>, %arg4: memref<8x1xf32, #tpu.memory_space<vmem>>, %arg5: memref<8x256xf32, #tpu.memory_space<vmem>>) attributes {dimension_semantics = [#tpu.dimension_semantics<parallel>, #tpu.dimension_semantics<parallel>], iteration_bounds = array<i64: 1, 1>, scalar_prefetch = 0 : i64, scratch_operands = 0 : i64, tpu.core_type = #tpu.core_type<tc>, window_params = [{transform_indices = @transform_0, window_bounds = array<i64: 8, 256>}, {transform_indices = @transform_1, window_bounds = array<i64: 8, 1>}, {transform_indices = @transform_2, window_bounds = array<i64: 8, 1>}, {transform_indices = @transform_3, window_bounds = array<i64: 8, 256>}]} {
    %c0 = arith.constant 0 : index
    %c0_0 = arith.constant 0 : index
    %0 = vector.load %arg2[%c0, %c0_0] : memref<8x256xf32, #tpu.memory_space<vmem>>, vector<8x256xf32>
    %c0_1 = arith.constant 0 : index
    %c0_2 = arith.constant 0 : index
    %1 = vector.load %arg3[%c0_1, %c0_2] : memref<8x1xf32, #tpu.memory_space<vmem>>, vector<8x1xf32>
    %2 = vector.broadcast %1 : vector<8x1xf32> to vector<8x256xf32>
    %3 = arith.mulf %0, %2 : vector<8x256xf32>
    %c0_3 = arith.constant 0 : index
    %c0_4 = arith.constant 0 : index
    %4 = vector.load %arg4[%c0_3, %c0_4] : memref<8x1xf32, #tpu.memory_space<vmem>>, vector<8x1xf32>
    %5 = vector.broadcast %4 : vector<8x1xf32> to vector<8x256xf32>
    %6 = arith.addf %3, %5 : vector<8x256xf32>
    %c0_5 = arith.constant 0 : index
    %c0_6 = arith.constant 0 : index
    %7 = vector.load %arg5[%c0_5, %c0_6] : memref<8x256xf32, #tpu.memory_space<vmem>>, vector<8x256xf32>
    tpu.vector_store %arg5[%c0_5, %c0_6], %6 {strides = array<i32>} : memref<8x256xf32, #tpu.memory_space<vmem>>, vector<8x256xf32>,
    return
  }
  func.func @transform_0(%arg0: i32, %arg1: i32) -> (i32, i32) {
    %c0_i32 = arith.constant 0 : i32
    return %arg0, %arg1 : i32, i32
  }
  func.func @transform_1(%arg0: i32, %arg1: i32) -> (i32, i32) {
    %c0_i32 = arith.constant 0 : i32
    %c0_i32_0 = arith.constant 0 : i32
    return %arg0, %c0_i32 : i32, i32
  }
  func.func @transform_2(%arg0: i32, %arg1: i32) -> (i32, i32) {
    %c0_i32 = arith.constant 0 : i32
    %c0_i32_0 = arith.constant 0 : i32
    return %arg0, %c0_i32 : i32, i32
  }
  func.func @transform_3(%arg0: i32, %arg1: i32) -> (i32, i32) {
    %c0_i32 = arith.constant 0 : i32
    return %arg0, %arg1 : i32, i32
  }
}

</mosaic_0001>

<bundles_post_ra>
// kernel: tpu_custom_call.1
= control target key start
LH: loop header
LB: loop body
LE: loop exit
PB: predicated region body
PF: predicated region fallthrough
CT: control target
= control target key end

     0   :  { %s117_s0 = inlined_call_operand.vmem [shape: f32[8,256], index: 0, kind: input, shape index: {}]   ;;  %s118_s1 = inlined_call_operand.vmem [shape: f32[8,1], index: 1, kind: input, shape index: {}]   ;;  %s119_s2 = inlined_call_operand.vmem [shape: f32[8,1], index: 2, kind: input, shape index: {}]   ;;  %s120_s3 = inlined_call_operand.hbm [shape: f32[8,256], index: 3, kind: output, shape index: {}]  }
   0x1   :  { %v17_v0 = vld [vmem:[%s118_s1] sm:$0xff] }
   0x2   :  { %8 = vsyncpa [#allocation3], 0  ;;  %v80_v1 = vmov 0   ;;  %v25_v2 = vld [vmem:[%s119_s2] sm:$0xff]  ;;  %v16_v5 = vld [vmem:[%s117_s0 + $0x8] sm:$0xff]  ;;  %s81_s1 = smov [#allocation2]  }
   0x3   :  { %53 = vset.pattern.permute.xlu0 %v80_v1  ;;  %v15_v4 = vld [vmem:[%s117_s0] sm:$0xff]  ;;  %s40_s20 = sshll.u32 %s81_s1, 4  ;;  %s42_s23 = sshll.u32 %s120_s3, 4  ;;  %s41_s20 = int_to_ptr.vmem [resolvable:$true] %s40_s20  ;;  %s43_s23 = int_to_ptr.hbm [resolvable:$true] %s42_s23 }
   0x4   :  { %20 = vperm.xlu0 %53, %v17_v0  }
   0xc   :  { %28 = vperm.xlu0 %53, %v25_v2  }
  0x76   :  { %v21_v3 = vpop.permute.xlu0 %20 }
  0x77   :  { %v23_v6 = vmul.f32 %v21_v3, %v15_v4  ;;  %v24_v7 = vmul.f32 %v21_v3, %v16_v5 }
  0x7e   :  { %v29_v8 = vpop.permute.xlu0 %28 }
  0x7f   :  { %v31_v9 = vadd.f32 %v29_v8, %v23_v6  ;;  %v32_v10 = vadd.f32 %v29_v8, %v24_v7 }
  0x81   :  { %33 = vst [vmem:[#allocation2] sm:$0xff] %v31_v9 }
  0x82   :  { %34 = vst [vmem:[#allocation2 + $0x8] sm:$0xff] %v32_v10 }
  0x83   :  { %45 = dma.vmem_to_hbm [thread:$0]  %s41_s20, 256, %s43_s23, [#allocation3]  }
  0x84   :  { %78 = dma.done.wait [#allocation3], 256  }
  0x85   :  { %79 = vsyncadd [#allocation3], 4294967040 }
  0x86   :  { %50 = vsyncpa [#allocation3], 1 }

</bundles_post_ra>
